<compile_context>
chip_gen: v5e
topology: v5e:2x2
jax: 0.10.0
libtpu: 0.0.40
codegen_flags: <defaults>
</compile_context>

<pallas_src>
import functools
import math

import jax
import jax.numpy as jnp
from jax.experimental import pallas as pl
from jax.experimental.pallas import tpu as pltpu


def _round_up(x, m):
    return ((x + m - 1) // m) * m


def _row_tile(m, preferred):
    """Row tile: multiple of 8, capped at `preferred`.  Rows are padded up to a
    multiple of the tile in the wrapper, so the tile never has to divide m."""
    t = min(preferred, _round_up(m, 8))
    t -= t % 8
    return max(t, 8)


def _vmem_limit(tile_bytes):
    """Request what the tiles need (plus compiler headroom), never more than
    ~75% of this chip's physical VMEM (128 MiB v5e/v6e, 64 MiB per TC v7x)."""
    try:
        cap = pltpu.get_tpu_info().vmem_capacity_bytes
    except Exception:  # conservative fallback if the query is unavailable
        cap = 64 << 20
    hi = int(cap * 3 // 4)
    lo = min(32 << 20, hi)
    return int(min(max(tile_bytes + (8 << 20), lo), hi))


# ---------------------------------------------------------------------------
# Linear (matmul + bias), rows tiled, full K / N resident per block.
# ---------------------------------------------------------------------------
def _linear_kernel(x_ref, w_ref, b_ref, o_ref):
    acc = jnp.dot(x_ref[...], w_ref[...], preferred_element_type=jnp.float32)
    o_ref[...] = (acc + b_ref[...].astype(jnp.float32)).astype(o_ref.dtype)


def _linear(x, w, b, *, row_tile=512):
    """x: (M, K), w: (K, N), b: (N,) -> (M, N) (torch Linear, W stored (K, N))."""
    M, K = x.shape
    K2, N = w.shape
    assert K == K2
    tm = _row_tile(M, row_tile)
    Mp = _round_up(M, tm)
    if Mp != M:
        x = jnp.pad(x, ((0, Mp - M), (0, 0)))
    b2d = b.reshape(1, N)

    itemsize = jnp.dtype(x.dtype).itemsize
    tile_bytes = itemsize * (2 * tm * K + 2 * K * N + 2 * N + 2 * tm * N) \
        + 4 * tm * N  # fp32 accumulator

    out = pl.pallas_call(
        _linear_kernel,
        out_shape=jax.ShapeDtypeStruct((Mp, N), x.dtype),
        grid_spec=pltpu.PrefetchScalarGridSpec(
            num_scalar_prefetch=0,
            grid=(Mp // tm,),
            in_specs=[
                pl.BlockSpec((tm, K), lambda i: (i, 0)),
                pl.BlockSpec((K, N), lambda i: (0, 0)),
                pl.BlockSpec((1, N), lambda i: (0, 0)),
            ],
            out_specs=pl.BlockSpec((tm, N), lambda i: (i, 0)),
        ),
        compiler_params=pltpu.CompilerParams(
            dimension_semantics=("parallel",),
            vmem_limit_bytes=_vmem_limit(tile_bytes),
        ),
    )(x, w, b2d)
    return out[:M] if Mp != M else out


# ---------------------------------------------------------------------------
# Cross-attention: q tiles on the grid, heads unrolled inside the kernel,
# K/V fully resident (short conditioning sequence), single-pass softmax.
# Scale (1/sqrt(D)) is already folded into the q projection by the wrapper.
# ---------------------------------------------------------------------------
def _cross_attn_kernel(num_heads, head_dim, q_ref, kv_ref, o_ref):
    C = num_heads * head_dim
    for h in range(num_heads):
        lo = h * head_dim
        hi = lo + head_dim
        qh = q_ref[:, lo:hi]                  # (tq, D)  native dtype, pre-scaled
        kh = kv_ref[:, lo:hi]                 # (Lk, D)  k = kv[:, :C]
        vh = kv_ref[:, C + lo:C + hi]         # (Lk, D)  v = kv[:, C:]

        s = jnp.einsum("qd,kd->qk", qh, kh,
                       preferred_element_type=jnp.float32)      # (tq, Lk) fp32
        m = jnp.max(s, axis=-1, keepdims=True)
        e = jnp.exp(s - m)
        denom = jnp.sum(e, axis=-1, keepdims=True)
        oh = jnp.einsum("qk,kd->qd", e.astype(vh.dtype), vh,
                        preferred_element_type=jnp.float32)     # (tq, D) fp32
        oh = oh * pl.reciprocal(denom, approx=True)
        o_ref[:, lo:hi] = oh.astype(o_ref.dtype)


def _cross_attention(q, kv, num_heads, *, q_tile=256):
    """q: (Lq, C) (already scaled by 1/sqrt(D)), kv: (Lk, 2C) -> (Lq, C)."""
    Lq, C = q.shape
    Lk, C2 = kv.shape
    assert C2 == 2 * C and C % num_heads == 0
    D = C // num_heads

    tq = _row_tile(Lq, q_tile)
    Lqp = _round_up(Lq, tq)
    if Lqp != Lq:
        q = jnp.pad(q, ((0, Lqp - Lq), (0, 0)))

    itemsize = jnp.dtype(q.dtype).itemsize
    tile_bytes = (itemsize * (2 * tq * C + 2 * Lk * 2 * C + 2 * tq * C)
                  + 4 * (3 * tq * Lk + 2 * tq * D))   # fp32 logits / numerator

    # TODO(synk): for very long conditioning sequences (Lk >> 1024) the K/V
    # block would need a kv grid axis + online softmax; cross-attn cond is short.
    out = pl.pallas_call(
        functools.partial(_cross_attn_kernel, num_heads, D),
        out_shape=jax.ShapeDtypeStruct((Lqp, C), q.dtype),
        grid_spec=pltpu.PrefetchScalarGridSpec(
            num_scalar_prefetch=0,
            grid=(Lqp // tq,),
            in_specs=[
                pl.BlockSpec((tq, C), lambda i: (i, 0)),
                pl.BlockSpec((Lk, 2 * C), lambda i: (0, 0)),
            ],
            out_specs=pl.BlockSpec((tq, C), lambda i: (i, 0)),
        ),
        compiler_params=pltpu.CompilerParams(
            dimension_semantics=("parallel",),
            vmem_limit_bytes=_vmem_limit(tile_bytes),
        ),
    )(q, kv)
    return out[:Lq] if Lqp != Lq else out


# ---------------------------------------------------------------------------
# Full module forward
# ---------------------------------------------------------------------------
def multi_head_cross_attention(x, cond, params, num_heads, mask=None):
    """Forward of MultiHeadCrossAttention.

    x: (B, N, C); cond: (1, Lk, C) (any shape flattening to (Lk, C));
    params: wq (C,C), bq (C,), wkv (C,2C), bkv (2C,), wproj (C,C), bproj (C,).
    """
    if mask is not None:
        # TODO(synk): xformers BlockDiagonalMask (variable-length cond per batch)
        # not implemented; needs per-batch segment ids masked inside the kernel.
        raise NotImplementedError("mask is not supported")

    B, N, C = x.shape
    D = C // num_heads
    Lq = B * N
    cond2d = cond.reshape(-1, C)

    # Fold 1/sqrt(head_dim) into the q projection (free; removes per-tile
    # rescale work inside the attention kernel).
    scale = 1.0 / math.sqrt(D)
    wq = params["wq"] * scale
    bq = params["bq"] * scale

    q = _linear(x.reshape(Lq, C), wq, bq)                 # (Lq, C), pre-scaled
    kv = _linear(cond2d, params["wkv"], params["bkv"])    # (Lk, 2C) = [k | v]

    o = _cross_attention(q, kv, num_heads)                # (Lq, C)

    out = _linear(o, params["wproj"], params["bproj"])    # (Lq, C)
    # attn_drop / proj_drop are identity at the module defaults (p = 0.0).
    # TODO(synk): dropout for p > 0 would use pltpu.prng_* inside the kernels.
    return out.reshape(B, N, C)


# ---------------------------------------------------------------------------
# Pure-JAX reference
# ---------------------------------------------------------------------------
def _reference_mhca(x, cond, params, num_heads):
    B, N, C = x.shape
    D = C // num_heads
    q = x.reshape(-1, C) @ params["wq"] + params["bq"]
    kv = cond.reshape(-1, C) @ params["wkv"] + params["bkv"]
    k, v = kv[:, :C], kv[:, C:]
    q = q.reshape(B * N, num_heads, D)
    k = k.reshape(-1, num_heads, D)
    v = v.reshape(-1, num_heads, D)
    s = jnp.einsum("qhd,khd->hqk", q, k) / math.sqrt(D)
    p = jax.nn.softmax(s, axis=-1)
    o = jnp.einsum("hqk,khd->qhd", p, v).reshape(B * N, C)
    out = o @ params["wproj"] + params["bproj"]
    return out.reshape(B, N, C)


if __name__ == "__main__":
    key = jax.random.PRNGKey(0)
    B, N, C, H = 2, 16, 32, 4            # d_model=32, num_heads=4, head_dim=8
    L_COND = 12                          # total conditioning tokens

    keys = jax.random.split(key, 8)
    x = jax.random.normal(keys[0], (B, N, C), dtype=jnp.float32)
    cond = jax.random.normal(keys[1], (1, L_COND, C), dtype=jnp.float32)
    w_scale = 1.0 / math.sqrt(C)
    params = {
        "wq": jax.random.normal(keys[2], (C, C), jnp.float32) * w_scale,
        "bq": jax.random.normal(keys[3], (C,), jnp.float32) * 0.1,
        "wkv": jax.random.normal(keys[4], (C, 2 * C), jnp.float32) * w_scale,
        "bkv": jax.random.normal(keys[5], (2 * C,), jnp.float32) * 0.1,
        "wproj": jax.random.normal(keys[6], (C, C), jnp.float32) * w_scale,
        "bproj": jax.random.normal(keys[7], (C,), jnp.float32) * 0.1,
    }

    out = multi_head_cross_attention(x, cond, params, num_heads=H)
    out = jax.block_until_ready(out)

    ref = _reference_mhca(x, cond, params, H)
    assert out.shape == (B, N, C)
    assert jnp.allclose(out, ref, atol=2e-2, rtol=2e-2), (
        "mismatch vs reference, max abs err = "
        + str(float(jnp.max(jnp.abs(out - ref)))))

    print("KERNEL_OK")
</pallas_src>

<mosaic_0001>
module attributes {stable_mosaic.version = 11 : i64} {
  func.func @_linear_kernel(%arg0: i32, %arg1: memref<32x32xf32, #tpu.memory_space<vmem>>, %arg2: memref<32x32xf32, #tpu.memory_space<vmem>>, %arg3: memref<1x32xf32, #tpu.memory_space<vmem>>, %arg4: memref<32x32xf32, #tpu.memory_space<vmem>>) attributes {dimension_semantics = [#tpu.dimension_semantics<parallel>], iteration_bounds = array<i64: 1>, scalar_prefetch = 0 : i64, scratch_operands = 0 : i64, tpu.core_type = #tpu.core_type<tc>, window_params = [{transform_indices = @transform_0, window_bounds = array<i64: 32, 32>}, {pipeline_mode = #tpu.pipeline_mode<synchronous>, transform_indices = @transform_1, window_bounds = array<i64: 32, 32>}, {pipeline_mode = #tpu.pipeline_mode<synchronous>, transform_indices = @transform_2, window_bounds = array<i64: 1, 32>}, {transform_indices = @transform_3, window_bounds = array<i64: 32, 32>}]} {
    %c0 = arith.constant 0 : index
    %c0_0 = arith.constant 0 : index
    %0 = vector.load %arg1[%c0, %c0_0] : memref<32x32xf32, #tpu.memory_space<vmem>>, vector<32x32xf32>
    %c0_1 = arith.constant 0 : index
    %c0_2 = arith.constant 0 : index
    %1 = vector.load %arg2[%c0_1, %c0_2] : memref<32x32xf32, #tpu.memory_space<vmem>>, vector<32x32xf32>
    %cst = arith.constant dense<0.000000e+00> : vector<32x32xf32>
    %2 = tpu.matmul %0, %1, %cst {dimension_numbers = #tpu.dot_dimension_numbers<[1], [0], [0], [1], [0, 0, 1, 1], [], []>} : vector<32x32xf32>, vector<32x32xf32>, vector<32x32xf32> -> vector<32x32xf32>
    %c0_3 = arith.constant 0 : index
    %c0_4 = arith.constant 0 : index
    %3 = vector.load %arg3[%c0_3, %c0_4] : memref<1x32xf32, #tpu.memory_space<vmem>>, vector<1x32xf32>
    %4 = vector.broadcast %3 : vector<1x32xf32> to vector<32x32xf32>
    %5 = arith.addf %2, %4 : vector<32x32xf32>
    %c0_5 = arith.constant 0 : index
    %c0_6 = arith.constant 0 : index
    %6 = vector.load %arg4[%c0_5, %c0_6] : memref<32x32xf32, #tpu.memory_space<vmem>>, vector<32x32xf32>
    tpu.vector_store %arg4[%c0_5, %c0_6], %5 {strides = array<i32>} : memref<32x32xf32, #tpu.memory_space<vmem>>, vector<32x32xf32>,
    return
  }
  func.func @transform_0(%arg0: i32) -> (i32, i32) {
    %c0_i32 = arith.constant 0 : i32
    %c0_i32_0 = arith.constant 0 : i32
    return %arg0, %c0_i32 : i32, i32
  }
  func.func @transform_1(%arg0: i32) -> (i32, i32) {
    %c0_i32 = arith.constant 0 : i32
    %c0_i32_0 = arith.constant 0 : i32
    %c0_i32_1 = arith.constant 0 : i32
    return %c0_i32, %c0_i32_0 : i32, i32
  }
  func.func @transform_2(%arg0: i32) -> (i32, i32) {
    %c0_i32 = arith.constant 0 : i32
    %c0_i32_0 = arith.constant 0 : i32
    %c0_i32_1 = arith.constant 0 : i32
    return %c0_i32, %c0_i32_0 : i32, i32
  }
  func.func @transform_3(%arg0: i32) -> (i32, i32) {
    %c0_i32 = arith.constant 0 : i32
    %c0_i32_0 = arith.constant 0 : i32
    return %arg0, %c0_i32 : i32, i32
  }
}

</mosaic_0001>

<bundles_post_ra>
// kernel: tpu_custom_call.1
= control target key start
LH: loop header
LB: loop body
LE: loop exit
PB: predicated region body
PF: predicated region fallthrough
CT: control target
= control target key end

     0   :  { %8 = vsyncpa [#allocation3], 0  ;;  %s279_s0 = inlined_call_operand.hbm [shape: f32[32,32], index: 0, kind: input, shape index: {}]   ;;  %s280_s1 = inlined_call_operand.hbm [shape: f32[32,32], index: 1, kind: input, shape index: {}]   ;;  %s281_s2 = inlined_call_operand.vmem [shape: f32[1,32], index: 2, kind: input, shape index: {}]   ;;  %s282_s3 = inlined_call_operand.hbm [shape: f32[32,32], index: 3, kind: output, shape index: {}]  }
   0x1   :  { %9 = vsyncpa [#allocation6], 0 }
   0x2   :  { %10 = vsyncpa [#allocation4], 0  ;;  %s15_s14 = sshll.u32 %s279_s0, 4  ;;  %s225_s15 = smov [#allocation2]   ;;  %s16_s14 = int_to_ptr.hbm [resolvable:$true] %s15_s14 }
   0x3   :  { %s17_s16 = sshll.u32 %s225_s15, 4  ;;  %s28_s19 = sshll.u32 %s280_s1, 4  ;;  %s18_s16 = int_to_ptr.vmem [resolvable:$true] %s17_s16  ;;  %s29_s19 = int_to_ptr.hbm [resolvable:$true] %s28_s19 }
   0x4   :  { %s226_s20 = smov 128   ;;  %s227_s21 = smov 8  }
   0x5   :  { %23 = dma.hbm_to_vmem [thread:$0]  %s16_s14, 512, %s18_s16, [#allocation3], %s226_s20, %s226_s20, %s227_s21  }
   0x6   :  { %s228_s22 = smov [#allocation5]  }
   0x7   :  { %s30_s23 = sshll.u32 %s228_s22, 4  ;;  %s31_s23 = int_to_ptr.vmem [resolvable:$true] %s30_s23 }
   0x8   :  { %36 = dma.hbm_to_vmem [thread:$0]  %s29_s19, 512, %s31_s23, [#allocation6], %s226_s20, %s226_s20, %s227_s21  }
   0x9   :  { %219 = dma.done.wait [#allocation3], 512  }
   0xa   :  { %220 = vsyncadd [#allocation3], 4294966784 }
   0xb   :  { %221 = dma.done.wait [#allocation6], 512  }
   0xc   :  { %222 = vsyncadd [#allocation6], 4294966784  ;;  %v54_v0 = vld [vmem:[#allocation5 + $0x18] sm:$0xff]  ;;  %v53_v1 = vld [vmem:[#allocation5 + $0x10] sm:$0xff]  ;;  %vm59_vm0 = vcmask 261120   ;;  %s229_s24 = smov [#allocation7]  }
   0xd   :  { %130 = vmatpush.msra.mxu2 %v54_v0  ;;  %131 = vmatpush.msra.mxu3 %v54_v0  ;;  %v52_v2 = vld [vmem:[#allocation5 + $0x8] sm:$0xff]  ;;  %v51_v3 = vld [vmem:[#allocation5] sm:$0xff]  ;;  %v49_v4 = vld [vmem:[#allocation2 + $0x10] sm:$0xff]  ;;  %s109_s25 = sshll.u32 %s229_s24, 4  ;;  %s111_s28 = sshll.u32 %s282_s3, 4  ;;  %s110_s25 = int_to_ptr.vmem [resolvable:$true] %s109_s25  ;;  %s112_s28 = int_to_ptr.hbm [resolvable:$true] %s111_s28 }
   0xe   :  { %84 = vmatpush.msra.mxu0 %v54_v0  ;;  %129 = vmatpush.msra.mxu1 %v54_v0  ;;  %v50_v5 = vld [vmem:[#allocation2 + $0x18] sm:$0xff]  ;;  %v47_v6 = vld [vmem:[#allocation2] sm:$0xff]  ;;  %v48_v7 = vld [vmem:[#allocation2 + $0x8] sm:$0xff] }
   0xf   :  { %133 = vmatpush.msra.mxu2 %v53_v1  ;;  %134 = vmatpush.msra.mxu3 %v53_v1  ;;  %v146_v8 = vld [vmem:[%s281_s2] ss:$0 sm:$0xff] }
  0x10   :  { %85 = vmatpush.msra.mxu0 %v53_v1  ;;  %132 = vmatpush.msra.mxu1 %v53_v1 }
  0x11   :  { %136 = vmatpush.msra.mxu2 %v52_v2  ;;  %137 = vmatpush.msra.mxu3 %v52_v2 }
  0x12   :  { %86 = vmatpush.msra.mxu0 %v52_v2  ;;  %135 = vmatpush.msra.mxu1 %v52_v2 }
  0x13   :  { %139 = vmatpush.msra.mxu2 %v51_v3  ;;  %140 = vmatpush.msra.mxu3 %v51_v3 }
  0x14   :  { %127 = vmatmul.msk.f32.vlgmr.msra.gmra.mxu2 %vm59_vm0, %v49_v4  ;;  %128 = vmatmul.msk.f32.vlgmr.msra.gmra.mxu3 %vm59_vm0, %v50_v5 }
  0x15   :  { %87 = vmatpush.msra.mxu0 %v51_v3  ;;  %138 = vmatpush.msra.mxu1 %v51_v3 }
  0x16   :  { %125 = vmatmul.msk.f32.vlgmr.msra.gmra.mxu0 %vm59_vm0, %v47_v6  ;;  %126 = vmatmul.msk.f32.vlgmr.msra.gmra.mxu1 %vm59_vm0, %v48_v7 }
  0x93   :  { %v89_v9 = vpop.f32.mrf.mxu0  ;;  %v92_v10 = vpop.f32.mrf.mxu1 }
  0x94   :  { %v90_v11 = vadd.f32 %v146_v8, %v89_v9  ;;  %v93_v12 = vadd.f32 %v146_v8, %v92_v10 }
  0x96   :  { %101 = vst.msk [vmem:[#allocation7] sm:$0xff] %vm59_vm0, %v90_v11 }
  0x97   :  { %102 = vst.msk [vmem:[#allocation7 + $0x8] sm:$0xff] %vm59_vm0, %v93_v12  ;;  %v95_v13 = vpop.f32.mrf.mxu2  ;;  %v98_v14 = vpop.f32.mrf.mxu3 }
  0x98   :  { %v96_v15 = vadd.f32 %v146_v8, %v95_v13  ;;  %v99_v16 = vadd.f32 %v146_v8, %v98_v14 }
  0x9a   :  { %103 = vst.msk [vmem:[#allocation7 + $0x10] sm:$0xff] %vm59_vm0, %v96_v15 }
  0x9b   :  { %104 = vst.msk [vmem:[#allocation7 + $0x18] sm:$0xff] %vm59_vm0, %v99_v16 }
  0x9c   :  { %117 = dma.vmem_to_hbm [thread:$0]  %s110_s25, 512, %s112_s28, [#allocation4], %s226_s20, %s226_s20, %s227_s21  }
  0x9d   :  { %223 = dma.done.wait [#allocation4], 512  }
  0x9e   :  { %224 = vsyncadd [#allocation4], 4294966784 }
  0x9f   :  { %122 = vsyncpa [#allocation3], 1 }
  0xa0   :  { %123 = vsyncpa [#allocation6], 1 }
  0xa1   :  { %124 = vsyncpa [#allocation4], 1 }

</bundles_post_ra>
